<compile_context>
chip_gen: v7x
topology: tpu7x:2x2x1
jax: 0.10.0
libtpu: 0.0.40
codegen_flags: <defaults>
</compile_context>

<pallas_src>
import functools

import jax
import jax.numpy as jnp
from jax.experimental import pallas as pl
from jax.experimental.pallas import tpu as pltpu


LANE = 128       # lane granule (output-column padding)
SUBLANE = 8      # sublane granule (batch-tile / contraction padding)
NEG_PAD = -1e30  # bias for padded action lanes (can never win an argmax)


def _round_up(n, m):
    return (n + m - 1) // m * m


def _dqn_kernel(x_ref, w1_ref, b1_ref, w2_ref, b2_ref, w3_ref, b3_ref, o_ref):
    # Layer 1: (TB, Kp) @ (Kp, n1) -- f32 operands, f32 MXU accumulation.
    h1 = jnp.dot(x_ref[...], w1_ref[...], preferred_element_type=jnp.float32)
    h1 = jnp.maximum(h1 + b1_ref[...], 0.0)

    # Layer 2: (TB, n1) @ (n1, n2)
    h2 = jnp.dot(h1, w2_ref[...], preferred_element_type=jnp.float32)
    h2 = jnp.maximum(h2 + b2_ref[...], 0.0)

    # Layer 3 (no activation): (TB, n2) @ (n2, Np) -- Np lane-padded to 128.
    out = jnp.dot(h2, w3_ref[...], preferred_element_type=jnp.float32)
    o_ref[...] = (out + b3_ref[...]).astype(o_ref.dtype)


@functools.partial(jax.jit, static_argnames=("n_actions",))
def _dqn_apply(x, w1, b1, w2, b2, w3, b3, *, n_actions):
    """x: (B, K) or (K,) float32. Weights are already in padded kernel layout."""
    if x.ndim == 1:                      # mimic the PyTorch module's stacking
        x = x[None, :]
    B, K = x.shape
    Kp, n1 = w1.shape
    n2 = w2.shape[1]
    Np = w3.shape[1]

    # Adaptive batch tile: single grid step for small batches; >= 2 tiles for
    # B > 128 so the "parallel" batch axis splits across v7x's two TensorCores.
    if B <= 128:
        TB = _round_up(B, SUBLANE)
        Bp = TB
    else:
        TB = min(256, _round_up(pl.cdiv(B, 2), SUBLANE))
        Bp = _round_up(B, TB)
    num_tiles = Bp // TB

    x = x.astype(jnp.float32)
    if Bp != B or Kp != K:
        # Single wrapper op: pad batch to a whole number of tiles and the
        # feature dim 6 -> 8 (sublane granule) in one go.
        x = jnp.pad(x, ((0, Bp - B), (0, Kp - K)))

    flops = 2 * Bp * (Kp * n1 + n1 * n2 + n2 * Np)
    bytes_accessed = 4 * (Bp * Kp + Kp * n1 + n1 + n1 * n2 + n2
                          + n2 * Np + Np + Bp * Np)

    full = lambda arr: pl.BlockSpec(arr.shape, lambda i: (0, 0))

    out_pad = pl.pallas_call(
        _dqn_kernel,
        out_shape=jax.ShapeDtypeStruct((Bp, Np), jnp.float32),
        grid=(num_tiles,),
        in_specs=[
            pl.BlockSpec((TB, Kp), lambda i: (i, 0)),   # x: streamed per tile
            full(w1), full(b1),                         # weights: VMEM-resident
            full(w2), full(b2),
            full(w3), full(b3),
        ],
        out_specs=pl.BlockSpec((TB, Np), lambda i: (i, 0)),
        compiler_params=pltpu.CompilerParams(
            dimension_semantics=("parallel",)),
        cost_estimate=pl.CostEstimate(
            flops=flops, transcendentals=0, bytes_accessed=bytes_accessed),
    )(x, w1, b1, w2, b2, w3, b3)

    # Drop batch padding and padded action lanes. This stays inside the jit so
    # it fuses with whatever consumes the Q-values (e.g. an argmax).
    return out_pad[:B, :n_actions]


def make_dqn_forward(params):
    """One-time weight prep (padding to the kernel layout) + jitted forward fn.

    params: (w1, b1, w2, b2, w3, b3) with weights (in_features, out_features),
    biases (out_features,) or (1, out_features). Returns forward(x) ->
    (B, n_actions) float32.
    """
    w1, b1, w2, b2, w3, b3 = params
    K, n1 = w1.shape
    n2 = w2.shape[1]
    n_actions = w3.shape[1]
    Kp = _round_up(K, SUBLANE)           # 6  -> 8   (contraction / sublane pad)
    Np = _round_up(n_actions, LANE)      # 17 -> 128 (lane-dense output)

    w1_p = jnp.zeros((Kp, n1), jnp.float32).at[:K, :].set(
        jnp.asarray(w1, jnp.float32))
    b1_p = jnp.asarray(b1, jnp.float32).reshape(1, n1)
    w2_p = jnp.asarray(w2, jnp.float32)
    b2_p = jnp.asarray(b2, jnp.float32).reshape(1, n2)
    w3_p = jnp.zeros((n2, Np), jnp.float32).at[:, :n_actions].set(
        jnp.asarray(w3, jnp.float32))
    # Padded action lanes get a huge negative bias so they can never win an
    # argmax even if someone consumes the padded buffer directly.
    b3_p = jnp.full((1, Np), NEG_PAD, jnp.float32).at[:, :n_actions].set(
        jnp.asarray(b3, jnp.float32).reshape(1, n_actions))

    wargs = (w1_p, b1_p, w2_p, b2_p, w3_p, b3_p)

    def forward(x):
        return _dqn_apply(x, *wargs, n_actions=n_actions)

    return forward


def init_dqn_params(key, n_actions=17, input_size=6, nlayer1=256, nlayer2=256):
    """Deterministic init matching torch.nn.Linear default
    (U[-1/sqrt(fan_in), 1/sqrt(fan_in)]). Weights are (in_features, out_features)."""
    ks = jax.random.split(key, 6)

    def linear(kw, kb, fan_in, fan_out):
        bound = 1.0 / jnp.sqrt(jnp.float32(fan_in))
        w = jax.random.uniform(kw, (fan_in, fan_out), jnp.float32, -bound, bound)
        b = jax.random.uniform(kb, (1, fan_out), jnp.float32, -bound, bound)
        return w, b

    w1, b1 = linear(ks[0], ks[1], input_size, nlayer1)
    w2, b2 = linear(ks[2], ks[3], nlayer1, nlayer2)
    w3, b3 = linear(ks[4], ks[5], nlayer2, n_actions)
    return (w1, b1, w2, b2, w3, b3)


def _reference_forward(x, params):
    w1, b1, w2, b2, w3, b3 = params
    h1 = jnp.maximum(x @ w1 + b1, 0.0)
    h2 = jnp.maximum(h1 @ w2 + b2, 0.0)
    return h2 @ w3 + b3


if __name__ == "__main__":
    key = jax.random.PRNGKey(0)
    k_params, k_x = jax.random.split(key)

    n_actions, input_size = 17, 6
    params = init_dqn_params(k_params, n_actions=n_actions, input_size=input_size)
    forward = make_dqn_forward(params)   # weight prep happens once, here

    # Batched path: non-multiple of the tile size -> exercises the 2-tile grid
    # (parallel across v7x TensorCores) plus batch/feature padding.
    batch = 200
    x = jax.random.normal(k_x, (batch, input_size), dtype=jnp.float32)
    out = jax.block_until_ready(forward(x))
    ref = _reference_forward(x, params)
    assert out.shape == (batch, n_actions), out.shape
    assert jnp.allclose(out, ref, atol=2e-2, rtol=2e-2), (
        "mismatch vs reference; max abs err = "
        f"{float(jnp.max(jnp.abs(out - ref)))}")

    # Small-batch path: single grid step.
    xs = x[:3]
    out_s = jax.block_until_ready(forward(xs))
    assert out_s.shape == (3, n_actions), out_s.shape
    assert jnp.allclose(out_s, _reference_forward(xs, params),
                        atol=2e-2, rtol=2e-2)

    # 1-D acting path (module stacks a single state vector).
    out1 = jax.block_until_ready(forward(x[0]))
    assert out1.shape == (1, n_actions), out1.shape
    assert jnp.allclose(out1, _reference_forward(x[:1], params),
                        atol=2e-2, rtol=2e-2)

    print("KERNEL_OK")
</pallas_src>

<mosaic_0001>
module attributes {stable_mosaic.version = 11 : i64} {
  func.func @_dqn_kernel(%arg0: i32, %arg1: memref<104x8xf32, #tpu.memory_space<vmem>>, %arg2: memref<8x256xf32, #tpu.memory_space<vmem>>, %arg3: memref<1x256xf32, #tpu.memory_space<vmem>>, %arg4: memref<256x256xf32, #tpu.memory_space<vmem>>, %arg5: memref<1x256xf32, #tpu.memory_space<vmem>>, %arg6: memref<256x128xf32, #tpu.memory_space<vmem>>, %arg7: memref<1x128xf32, #tpu.memory_space<vmem>>, %arg8: memref<104x128xf32, #tpu.memory_space<vmem>>) attributes {dimension_semantics = [#tpu.dimension_semantics<parallel>], iteration_bounds = array<i64: 2>, scalar_prefetch = 0 : i64, scratch_operands = 0 : i64, tpu.core_type = #tpu.core_type<tc>, window_params = [{transform_indices = @transform_0, window_bounds = array<i64: 104, 8>}, {pipeline_mode = #tpu.pipeline_mode<synchronous>, transform_indices = @transform_1, window_bounds = array<i64: 8, 256>}, {pipeline_mode = #tpu.pipeline_mode<synchronous>, transform_indices = @transform_2, window_bounds = array<i64: 1, 256>}, {pipeline_mode = #tpu.pipeline_mode<synchronous>, transform_indices = @transform_3, window_bounds = array<i64: 256, 256>}, {pipeline_mode = #tpu.pipeline_mode<synchronous>, transform_indices = @transform_4, window_bounds = array<i64: 1, 256>}, {pipeline_mode = #tpu.pipeline_mode<synchronous>, transform_indices = @transform_5, window_bounds = array<i64: 256, 128>}, {pipeline_mode = #tpu.pipeline_mode<synchronous>, transform_indices = @transform_6, window_bounds = array<i64: 1, 128>}, {transform_indices = @transform_7, window_bounds = array<i64: 104, 128>}]} {
    %c0 = arith.constant 0 : index
    %c0_0 = arith.constant 0 : index
    %0 = vector.load %arg1[%c0, %c0_0] : memref<104x8xf32, #tpu.memory_space<vmem>>, vector<104x8xf32>
    %c0_1 = arith.constant 0 : index
    %c0_2 = arith.constant 0 : index
    %1 = vector.load %arg2[%c0_1, %c0_2] : memref<8x256xf32, #tpu.memory_space<vmem>>, vector<8x256xf32>
    %cst = arith.constant dense<0.000000e+00> : vector<104x256xf32>
    %2 = tpu.matmul %0, %1, %cst {dimension_numbers = #tpu.dot_dimension_numbers<[1], [0], [0], [1], [0, 0, 1, 1], [], []>} : vector<104x8xf32>, vector<8x256xf32>, vector<104x256xf32> -> vector<104x256xf32>
    %c0_3 = arith.constant 0 : index
    %c0_4 = arith.constant 0 : index
    %3 = vector.load %arg3[%c0_3, %c0_4] : memref<1x256xf32, #tpu.memory_space<vmem>>, vector<1x256xf32>
    %4 = vector.broadcast %3 : vector<1x256xf32> to vector<104x256xf32>
    %5 = arith.addf %2, %4 : vector<104x256xf32>
    %cst_5 = arith.constant 0.000000e+00 : f32
    %6 = vector.broadcast %cst_5 : f32 to vector<104x256xf32>
    %7 = arith.maximumf %5, %6 : vector<104x256xf32>
    %c0_6 = arith.constant 0 : index
    %c0_7 = arith.constant 0 : index
    %8 = vector.load %arg4[%c0_6, %c0_7] : memref<256x256xf32, #tpu.memory_space<vmem>>, vector<256x256xf32>
    %cst_8 = arith.constant dense<0.000000e+00> : vector<104x256xf32>
    %9 = tpu.matmul %7, %8, %cst_8 {dimension_numbers = #tpu.dot_dimension_numbers<[1], [0], [0], [1], [0, 0, 1, 1], [], []>} : vector<104x256xf32>, vector<256x256xf32>, vector<104x256xf32> -> vector<104x256xf32>
    %c0_9 = arith.constant 0 : index
    %c0_10 = arith.constant 0 : index
    %10 = vector.load %arg5[%c0_9, %c0_10] : memref<1x256xf32, #tpu.memory_space<vmem>>, vector<1x256xf32>
    %11 = vector.broadcast %10 : vector<1x256xf32> to vector<104x256xf32>
    %12 = arith.addf %9, %11 : vector<104x256xf32>
    %cst_11 = arith.constant 0.000000e+00 : f32
    %13 = vector.broadcast %cst_11 : f32 to vector<104x256xf32>
    %14 = arith.maximumf %12, %13 : vector<104x256xf32>
    %c0_12 = arith.constant 0 : index
    %c0_13 = arith.constant 0 : index
    %15 = vector.load %arg6[%c0_12, %c0_13] : memref<256x128xf32, #tpu.memory_space<vmem>>, vector<256x128xf32>
    %cst_14 = arith.constant dense<0.000000e+00> : vector<104x128xf32>
    %16 = tpu.matmul %14, %15, %cst_14 {dimension_numbers = #tpu.dot_dimension_numbers<[1], [0], [0], [1], [0, 0, 1, 1], [], []>} : vector<104x256xf32>, vector<256x128xf32>, vector<104x128xf32> -> vector<104x128xf32>
    %c0_15 = arith.constant 0 : index
    %c0_16 = arith.constant 0 : index
    %17 = vector.load %arg7[%c0_15, %c0_16] : memref<1x128xf32, #tpu.memory_space<vmem>>, vector<1x128xf32>
    %18 = vector.broadcast %17 : vector<1x128xf32> to vector<104x128xf32>
    %19 = arith.addf %16, %18 : vector<104x128xf32>
    %c0_17 = arith.constant 0 : index
    %c0_18 = arith.constant 0 : index
    %20 = vector.load %arg8[%c0_17, %c0_18] : memref<104x128xf32, #tpu.memory_space<vmem>>, vector<104x128xf32>
    tpu.vector_store %arg8[%c0_17, %c0_18], %19 {strides = array<i32>} : memref<104x128xf32, #tpu.memory_space<vmem>>, vector<104x128xf32>,
    return
  }
  func.func @transform_0(%arg0: i32) -> (i32, i32) {
    %c0_i32 = arith.constant 0 : i32
    %c0_i32_0 = arith.constant 0 : i32
    return %arg0, %c0_i32 : i32, i32
  }
  func.func @transform_1(%arg0: i32) -> (i32, i32) {
    %c0_i32 = arith.constant 0 : i32
    %c0_i32_0 = arith.constant 0 : i32
    %c0_i32_1 = arith.constant 0 : i32
    return %c0_i32, %c0_i32_0 : i32, i32
  }
  func.func @transform_2(%arg0: i32) -> (i32, i32) {
    %c0_i32 = arith.constant 0 : i32
    %c0_i32_0 = arith.constant 0 : i32
    %c0_i32_1 = arith.constant 0 : i32
    return %c0_i32, %c0_i32_0 : i32, i32
  }
  func.func @transform_3(%arg0: i32) -> (i32, i32) {
    %c0_i32 = arith.constant 0 : i32
    %c0_i32_0 = arith.constant 0 : i32
    %c0_i32_1 = arith.constant 0 : i32
    return %c0_i32, %c0_i32_0 : i32, i32
  }
  func.func @transform_4(%arg0: i32) -> (i32, i32) {
    %c0_i32 = arith.constant 0 : i32
    %c0_i32_0 = arith.constant 0 : i32
    %c0_i32_1 = arith.constant 0 : i32
    return %c0_i32, %c0_i32_0 : i32, i32
  }
  func.func @transform_5(%arg0: i32) -> (i32, i32) {
    %c0_i32 = arith.constant 0 : i32
    %c0_i32_0 = arith.constant 0 : i32
    %c0_i32_1 = arith.constant 0 : i32
    return %c0_i32, %c0_i32_0 : i32, i32
  }
  func.func @transform_6(%arg0: i32) -> (i32, i32) {
    %c0_i32 = arith.constant 0 : i32
    %c0_i32_0 = arith.constant 0 : i32
    %c0_i32_1 = arith.constant 0 : i32
    return %c0_i32, %c0_i32_0 : i32, i32
  }
  func.func @transform_7(%arg0: i32) -> (i32, i32) {
    %c0_i32 = arith.constant 0 : i32
    %c0_i32_0 = arith.constant 0 : i32
    return %arg0, %c0_i32 : i32, i32
  }
}

</mosaic_0001>

<bundles_post_ra>
// kernel: _dqn_apply.1
= control target key start
LH: loop header
LB: loop body
LE: loop exit
PB: predicated region body
PF: predicated region fallthrough
CT: control target
= control target key end

     0   :  { %12 = vsyncpa [#allocation3], 0  ;;  %s1326_s24 = smov 0   ;;  %s1742_s0 = inlined_call_operand.vmem [shape: f32[208,8], index: 0, kind: input, shape index: {}]   ;;  %s1743_s1 = inlined_call_operand.vmem [shape: f32[8,256], index: 1, kind: input, shape index: {}]   ;;  %s1744_s2 = inlined_call_operand.vmem [shape: f32[1,256], index: 2, kind: input, shape index: {}]   ;;  %s1745_s3 = inlined_call_operand.vmem [shape: f32[256,256], index: 3, kind: input, shape index: {}]   ;;  %s1746_s4 = inlined_call_operand.vmem [shape: f32[1,256], index: 4, kind: input, shape index: {}]   ;;  %s1747_s5 = inlined_call_operand.hbm [shape: f32[256,128], index: 5, kind: input, shape index: {}]   ;;  %s1748_s6 = inlined_call_operand.vmem [shape: f32[1,128], index: 6, kind: input, shape index: {}]   ;;  %s1749_s7 = inlined_call_operand.vmem [shape: f32[208,128], index: 7, kind: output, shape index: {}]  }
   0x1 LB: > { %s1028_s25 = sadd.s32 4294967295, %s1280_s24   ;;  %p1030_p0 = scmp.ge.s32.totalorder %s1280_s24, 1  ;;  %s1280_s24 = sphi %s1326_s24, %s18_s24  }
   0x2   : > { %p201_p1 = scmp.lt.s32.totalorder %s1280_s24, 3  ;;  %s1282_s26 = smov [#allocation2]  }
   0x3   : > { %s225_s27 = sshll.u32 %s1282_s26, 4  ;;  %p1340_p3 = scmp.eq.s32.totalorder %s1028_s25, 0  ;;  %s226_s27 = int_to_ptr.vmem [resolvable:$true] %s225_s27 }
   0x4   : > { %p1334_p2 = pnand %p1030_p0, %p201_p1  ;;  %s1242_s10 = scalar_lea.hbm %s1747_s5, 4096 }
   0x5   : > { %s1754_s29 = scalar_select %p1340_p3, 1, 0 }
   0x6   : > { %s1753_s28 = scalar_select %p1334_p2, 1, 0 }
   0x7   : > { %p1224_p4 = pneg %p1334_p2  ;;  %p1243_p6 = scmp.ne.s32.totalorder %s1747_s5, %s1242_s10 }
   0x8   : > { %p1249_p10 = scmp.lt.u32.totalorder %s1242_s10, %s1747_s5 }
   0x9   : > { %p1348_p5 = pnand %p1340_p3, %p1224_p4 }
   0xb   : > { %p1244_p7 = pneg %p1348_p5 }
   0xd   : > { %p1245_p8 = pnand %p1244_p7, %p1243_p6 }
   0xf   : > { %p1246_p9 = pneg %p1245_p8 }
  0x11   : > { %p1251_p11 = pnand %p1249_p10, %p1246_p9 }
  0x13   : > { %1254 = shalt.err (!%p1251_p11)
}
  0x14   : > { %s1255_s15 = scalar_lea.vmem %s226_s27, 4096  ;;  %p1263_p1 = scmp.lt.s32.totalorder %s226_s27, %s226_s27 }
  0x15   : > { %p1256_p12 = scmp.ne.s32.totalorder %s226_s27, %s1255_s15  ;;  %p1264_p4 = scmp.lt.s32.totalorder %s1255_s15, %s1255_s15 }
  0x17   : > { %p1258_p13 = pnand %p1256_p12, %p1244_p7  ;;  %p1265_p3 = por %p1264_p4, %p1263_p1 }
  0x19   : > { %p1259_p0 = pneg %p1258_p13 }
  0x1b   : > { %p1266_p2 = pnand %p1265_p3, %p1259_p0 }
  0x1d   : > { %1269 = shalt.err (!%p1266_p2)
}
  0x1e   : > { %s1283_s16 = smov 128   ;;  %s1284_s17 = smov 8  }
  0x1f   : > { %1227 = dma.hbm_to_vmem [thread:$0]  (!%p1348_p5), %s1747_s5, 4096, %s226_s27, [#allocation3], %s1283_s16, %s1283_s16, %s1284_s17  }
  0x20   : > { %p1756_p6 = scmp.ne.s32.totalorder %s1753_s28, 0 }
  0x21   : > { %p1757_p8 = scmp.ne.s32.totalorder (!%p1756_p6), %s1754_s29, 0 }
  0x22   : > { %253 = sbr.rel (%p1756_p6) target bundleno = 752 (0x2f0), region = 48 }
  0x29   : > { %1275 = dma.done.wait (%p1757_p8), [#allocation3], 4096  }
  0x2a   : > { %1277 = vsyncadd (%p1757_p8), [#allocation3], 4294963200  ;;  %s285_s20 = smul.u32 13, %s1028_s25  ;;  %v1285_v0 = vmov 0.0   ;;  %v311_v1 = vld [vmem:[%s1743_s1 + $0x8] sm:$0xff]  ;;  %v310_v2 = vld [vmem:[%s1743_s1] sm:$0xff] }
  0x2b   : > { %428 = vmatprep.mubr.f32.mxu0 %v1285_v0  ;;  %vm324_vm0 = vcmask 64512   ;;  %364 = vmatprep.subr.mxu0 %v311_v1  ;;  %v534_v4 = vld [vmem:[%s1745_s3 + $0x8] sm:$0xff]  ;;  %v536_v6 = vld [vmem:[%s1745_s3 + $0x18] sm:$0xff]  ;;  %v533_v7 = vld [vmem:[%s1745_s3] sm:$0xff] }
  0x2c   : > { %p286_p2 = scmp.lt.s32.totalorder %s285_s20, 25  ;;  %365 = vmatpush1.msra.mxu0 %v310_v2  ;;  %v1124_v8 = vpack.c.bf16 %v536_v6, %v534_v4  ;;  %v535_v9 = vld [vmem:[%s1745_s3 + $0x10] sm:$0xff]  ;;  %v538_v10 = vld [vmem:[%s1745_s3 + $0x28] sm:$0xff]  ;;  %v540_v11 = vld [vmem:[%s1745_s3 + $0x38] sm:$0xff] }
  0x2d   : > { %v1126_v12 = vpack.c.bf16 %v535_v9, %v533_v7  ;;  %v1128_v13 = vpack.c.bf16 %v540_v11, %v538_v10  ;;  %v537_v14 = vld [vmem:[%s1745_s3 + $0x20] sm:$0xff]  ;;  %v539_v15 = vld [vmem:[%s1745_s3 + $0x30] sm:$0xff]  ;;  %v542_v16 = vld [vmem:[%s1745_s3 + $0x48] sm:$0xff] }
  0x2e   : > { %s1759_s20 = smov (!%p286_p2, %s285_s20), 25  ;;  %1125 = vmatprep.subr.bf16.mxu1 %v1124_v8  ;;  %v544_v18 = vld [vmem:[%s1745_s3 + $0x58] sm:$0xff]  ;;  %v1130_v19 = vpack.c.bf16 %v539_v15, %v537_v14  ;;  %v541_v21 = vld [vmem:[%s1745_s3 + $0x40] sm:$0xff]  ;;  %v543_v22 = vld [vmem:[%s1745_s3 + $0x50] sm:$0xff] }
  0x2f   : > { %s1035_s21 = sshll.u32 %s1759_s20, 3  ;;  %1127 = vmatpush1.bf16.msra.mxu1 %v1126_v12  ;;  %v1132_v20 = vpack.c.bf16 %v544_v18, %v542_v16  ;;  %v546_v23 = vld [vmem:[%s1745_s3 + $0x68] sm:$0xff]  ;;  %v548_v24 = vld [vmem:[%s1745_s3 + $0x78] sm:$0xff]  ;;  %v1134_v26 = vpack.c.bf16 %v543_v22, %v541_v21  ;;  %v545_v28 = vld [vmem:[%s1745_s3 + $0x60] sm:$0xff] }
  0x30   : > { %s1391_s29 = scalar_lea.vmem %s1742_s0, %s1035_s21  ;;  %1129 = vmatprep.subr.bf16.mxu1 %v1128_v13  ;;  %v1136_v27 = vpack.c.bf16 %v548_v24, %v546_v23  ;;  %v547_v29 = vld [vmem:[%s1745_s3 + $0x70] sm:$0xff]  ;;  %v550_v30 = vld [vmem:[%s1745_s3 + $0x88] sm:$0xff]  ;;  %v552_v31 = vld [vmem:[%s1745_s3 + $0x98] sm:$0xff]  ;;  %s1711_s8 = scalar_lea.vmem %s1749_s7, %s1035_s21 }
  0x31   : > { %v297_v3 = vld [vmem:[%s1391_s29] sm:$0xff]  ;;  %v298_v5 = vld [vmem:[%s1391_s29 + $0x8] sm:$0xff]  ;;  %v299_v17 = vld [vmem:[%s1391_s29 + $0x10] sm:$0xff]  ;;  %v1138_v33 = vpack.c.bf16 %v547_v29, %v545_v28  ;;  %v1140_v34 = vpack.c.bf16 %v552_v31, %v550_v30 }
  0x32   : > { %1037 = vmatmul.mubr.msk.f32.vlgmr.msra.gmra.mrb[0].mxu0 %vm324_vm0, %v297_v3  ;;  %v300_v25 = vld [vmem:[%s1391_s29 + $0x18] sm:$0xff]  ;;  %v301_v32 = vld [vmem:[%s1391_s29 + $0x20] sm:$0xff]  ;;  %v551_v36 = vld [vmem:[%s1745_s3 + $0x90] sm:$0xff] }
  0x33   : > { %434 = vmatprep.mubr.f32.mxu0 %v1285_v0  ;;  %1131 = vmatpush1.bf16.msra.mxu1 %v1130_v19  ;;  %v549_v35 = vld [vmem:[%s1745_s3 + $0x80] sm:$0xff]  ;;  %v554_v37 = vld [vmem:[%s1745_s3 + $0xa8] sm:$0xff]  ;;  %v556_v38 = vld [vmem:[%s1745_s3 + $0xb8] sm:$0xff] }
  0x34   : > { %1133 = vmatprep.subr.bf16.mxu1 %v1132_v20  ;;  %v302_v39 = vld [vmem:[%s1391_s29 + $0x28] sm:$0xff]  ;;  %v1142_v40 = vpack.c.bf16 %v551_v36, %v549_v35  ;;  %v1144_v41 = vpack.c.bf16 %v556_v38, %v554_v37  ;;  %v553_v42 = vld [vmem:[%s1745_s3 + $0xa0] sm:$0xff]  ;;  %v555_v43 = vld [vmem:[%s1745_s3 + $0xb0] sm:$0xff] }
  0x35   : > { %v558_v44 = vld [vmem:[%s1745_s3 + $0xc8] sm:$0xff]  ;;  %v560_v45 = vld [vmem:[%s1745_s3 + $0xd8] sm:$0xff]  ;;  %v303_v46 = vld [vmem:[%s1391_s29 + $0x30] sm:$0xff]  ;;  %v1146_v47 = vpack.c.bf16 %v555_v43, %v553_v42 }
  0x36   : > { %1038 = vmatmul.mubr.msk.f32.gmra.mrb[2].mxu0 %vm324_vm0, %v298_v5  ;;  %v1148_v48 = vpack.c.bf16 %v560_v45, %v558_v44  ;;  %v557_v49 = vld [vmem:[%s1745_s3 + $0xc0] sm:$0xff]  ;;  %v559_v50 = vld [vmem:[%s1745_s3 + $0xd0] sm:$0xff]  ;;  %v562_v51 = vld [vmem:[%s1745_s3 + $0xe8] sm:$0xff] }
  0x37   : > { %440 = vmatprep.mubr.f32.mxu0 %v1285_v0  ;;  %1135 = vmatpush1.bf16.msra.mxu1 %v1134_v26  ;;  %v564_v52 = vld [vmem:[%s1745_s3 + $0xf8] sm:$0xff]  ;;  %v1150_v54 = vpack.c.bf16 %v559_v50, %v557_v49  ;;  %v561_v56 = vld [vmem:[%s1745_s3 + $0xe0] sm:$0xff]  ;;  %v563_v57 = vld [vmem:[%s1745_s3 + $0xf0] sm:$0xff] }
  0x38   : > { %1137 = vmatprep.subr.bf16.mxu1 %v1136_v27  ;;  %v304_v53 = vld [vmem:[%s1391_s29 + $0x38] sm:$0xff]  ;;  %v1152_v55 = vpack.c.bf16 %v564_v52, %v562_v51  ;;  %v566_v58 = vld [vmem:[%s1745_s3 + $0x108] sm:$0xff]  ;;  %v305_v60 = vld [vmem:[%s1391_s29 + $0x40] sm:$0xff]  ;;  %v1154_v61 = vpack.c.bf16 %v563_v57, %v561_v56 }
  0x39   : > { %v568_v59 = vld [vmem:[%s1745_s3 + $0x118] sm:$0xff]  ;;  %v565_v63 = vld [vmem:[%s1745_s3 + $0x100] sm:$0xff]  ;;  %v567_v1 = vld [vmem:[%s1745_s3 + $0x110] sm:$0xff] }
  0x3a   : > { %1039 = vmatmul.mubr.msk.f32.gmra.mrb[4].mxu0 %vm324_vm0, %v299_v17  ;;  %v1156_v62 = vpack.c.bf16 %v568_v59, %v566_v58  ;;  %v570_v2 = vld [vmem:[%s1745_s3 + $0x128] sm:$0xff]  ;;  %v572_v3 = vld [vmem:[%s1745_s3 + $0x138] sm:$0xff]  ;;  %v1158_v5 = vpack.c.bf16 %v567_v1, %v565_v63  ;;  %v569_v7 = vld [vmem:[%s1745_s3 + $0x120] sm:$0xff] }
  0x3b   : > { %446 = vmatprep.mubr.f32.mxu0 %v1285_v0  ;;  %1139 = vmatpush1.bf16.msra.mxu1 %v1138_v33  ;;  %v306_v4 = vld [vmem:[%s1391_s29 + $0x48] sm:$0xff]  ;;  %v1160_v6 = vpack.c.bf16 %v572_v3, %v570_v2  ;;  %v571_v8 = vld [vmem:[%s1745_s3 + $0x130] sm:$0xff]  ;;  %v576_v10 = vld [vmem:[%s1745_s3 + $0x158] sm:$0xff] }
  0x3c   : > { %1141 = vmatprep.subr.bf16.mxu1 %v1140_v34  ;;  %v574_v9 = vld [vmem:[%s1745_s3 + $0x148] sm:$0xff]  ;;  %v307_v11 = vld [vmem:[%s1391_s29 + $0x50] sm:$0xff]  ;;  %v1162_v12 = vpack.c.bf16 %v571_v8, %v569_v7  ;;  %v573_v14 = vld [vmem:[%s1745_s3 + $0x140] sm:$0xff] }
  0x3d   : > { %v1164_v13 = vpack.c.bf16 %v576_v10, %v574_v9  ;;  %v575_v15 = vld [vmem:[%s1745_s3 + $0x150] sm:$0xff]  ;;  %v578_v16 = vld [vmem:[%s1745_s3 + $0x168] sm:$0xff]  ;;  %v580_v17 = vld [vmem:[%s1745_s3 + $0x178] sm:$0xff] }
  0x3e   : > { %1040 = vmatmul.mubr.msk.f32.gmra.mrb[6].mxu0 %vm324_vm0, %v300_v25  ;;  %v308_v18 = vld [vmem:[%s1391_s29 + $0x58] sm:$0xff]  ;;  %v1166_v19 = vpack.c.bf16 %v575_v15, %v573_v14  ;;  %v1168_v20 = vpack.c.bf16 %v580_v17, %v578_v16  ;;  %v577_v21 = vld [vmem:[%s1745_s3 + $0x160] sm:$0xff]  ;;  %v579_v22 = vld [vmem:[%s1745_s3 + $0x170] sm:$0xff] }
  0x3f   : > { %452 = vmatprep.mubr.f32.mxu0 %v1285_v0  ;;  %1143 = vmatpush1.bf16.msra.mxu1 %v1142_v40  ;;  %v582_v23 = vld [vmem:[%s1745_s3 + $0x188] sm:$0xff]  ;;  %v584_v24 = vld [vmem:[%s1745_s3 + $0x198] sm:$0xff]  ;;  %v309_v25 = vld [vmem:[%s1391_s29 + $0x60] sm:$0xff]  ;;  %v1170_v26 = vpack.c.bf16 %v579_v22, %v577_v21 }
  0x40   : > { %1145 = vmatprep.subr.bf16.mxu1 %v1144_v41  ;;  %v1172_v27 = vpack.c.bf16 %v584_v24, %v582_v23  ;;  %v581_v28 = vld [vmem:[%s1745_s3 + $0x180] sm:$0xff]  ;;  %v583_v29 = vld [vmem:[%s1745_s3 + $0x190] sm:$0xff]  ;;  %v586_v30 = vld [vmem:[%s1745_s3 + $0x1a8] sm:$0xff] }
  0x41   : > { %v1174_v31 = vpack.c.bf16 %v583_v29, %v581_v28  ;;  %v585_v33 = vld [vmem:[%s1745_s3 + $0x1a0] sm:$0xff]  ;;  %v587_v34 = vld [vmem:[%s1745_s3 + $0x1b0] sm:$0xff]  ;;  %v590_v35 = vld [vmem:[%s1745_s3 + $0x1c8] sm:$0xff] }
  0x42   : > { %1041 = vmatmul.mubr.msk.f32.gmra.mrb[8].mxu0 %vm324_vm0, %v301_v32  ;;  %v592_v36 = vld [vmem:[%s1745_s3 + $0x1d8] sm:$0xff]  ;;  %v1178_v37 = vpack.c.bf16 %v587_v34, %v585_v33  ;;  %v591_v40 = vld [vmem:[%s1745_s3 + $0x1d0] sm:$0xff]  ;;  %v594_v42 = vld [vmem:[%s1745_s3 + $0x1e8] sm:$0xff] }
  0x43   : > { %458 = vmatprep.mubr.f32.mxu0 %v1285_v0  ;;  %1147 = vmatpush1.bf16.msra.mxu1 %v1146_v47  ;;  %v1180_v38 = vpack.c.bf16 %v592_v36, %v590_v35  ;;  %v596_v43 = vld [vmem:[%s1745_s3 + $0x1f8] sm:$0xff]  ;;  %v593_v45 = vld [vmem:[%s1745_s3 + $0x1e0] sm:$0xff]  ;;  %v795_v49 = vld [vmem:[#allocation2 + $0x88] sm:$0xff] }
  0x44   : > { %1149 = vmatprep.subr.bf16.mxu1 %v1148_v48  ;;  %v1184_v44 = vpack.c.bf16 %v596_v43, %v594_v42  ;;  %v794_v48 = vld [vmem:[#allocation2 + $0x80] sm:$0xff]  ;;  %v779_v52 = vld [vmem:[#allocation2 + $0x8] sm:$0xff]  ;;  %v780_v57 = vld [vmem:[#allocation2 + $0x10] sm:$0xff] }
  0x45   : > { %v778_v50 = vld [vmem:[#allocation2] sm:$0xff]  ;;  %v1188_v51 = vpack.c.bf16 %v795_v49, %v794_v48  ;;  %v781_v58 = vld [vmem:[#allocation2 + $0x18] sm:$0xff]  ;;  %v783_v1 = vld [vmem:[#allocation2 + $0x28] sm:$0xff] }
  0x46   : > { %1042 = vmatmul.mubr.msk.f32.gmra.mrb[10].mxu0 %vm324_vm0, %v302_v39  ;;  %v589_v39 = vld [vmem:[%s1745_s3 + $0x1c0] sm:$0xff]  ;;  %v800_v2 = vld [vmem:[#allocation2 + $0xb0] sm:$0xff]  ;;  %v801_v3 = vld [vmem:[#allocation2 + $0xb8] sm:$0xff] }
  0x47   : > { %464 = vmatprep.mubr.f32.mxu0 %v1285_v0  ;;  %1151 = vmatpush1.bf16.msra.mxu1 %v1150_v54  ;;  %v1182_v41 = vpack.c.bf16 %v591_v40, %v589_v39  ;;  %v797_v54 = vld [vmem:[#allocation2 + $0x98] sm:$0xff]  ;;  %v798_v59 = vld [vmem:[#allocation2 + $0xa0] sm:$0xff]  ;;  %v803_v9 = vld [vmem:[#allocation2 + $0xc8] sm:$0xff] }
  0x48   : > { %1153 = vmatprep.subr.bf16.mxu1 %v1152_v55  ;;  %v1190_v55 = vpack.c.bf16 %v779_v52, %v778_v50  ;;  %1189 = vmatprep.subr.bf16.mxu0 %v1188_v51  ;;  %v782_v63 = vld [vmem:[#allocation2 + $0x20] sm:$0xff]  ;;  %v785_v7 = vld [vmem:[#allocation2 + $0x38] sm:$0xff]  ;;  %v804_v14 = vld [vmem:[#allocation2 + $0xd0] sm:$0xff] }
  0x49   : > { %v802_v8 = vld [vmem:[#allocation2 + $0xc0] sm:$0xff]  ;;  %v805_v15 = vld [vmem:[#allocation2 + $0xd8] sm:$0xff]  ;;  %v807_v21 = vld [vmem:[#allocation2 + $0xe8] sm:$0xff] }
  0x4a   : > { %1043 = vmatmul.mubr.msk.f32.gmra.mrb[12].mxu0 %vm324_vm0, %v303_v46  ;;  %v595_v46 = vld [vmem:[%s1745_s3 + $0x1f0] sm:$0xff]  ;;  %v1208_v17 = vpack.c.bf16 %v805_v15, %v804_v14  ;;  %v790_v24 = vld [vmem:[#allocation2 + $0x60] sm:$0xff] }
  0x4b   : > { %470 = vmatprep.mubr.f32.mxu0 %v1285_v0  ;;  %1155 = vmatpush1.bf16.msra.mxu1 %v1154_v61  ;;  %v1186_v47 = vpack.c.bf16 %v595_v46, %v593_v45  ;;  %v1194_v61 = vpack.c.bf16 %v781_v58, %v780_v57 }
  0x4c   : > { %1157 = vmatprep.subr.bf16.mxu1 %v1156_v62  ;;  %1191 = vmatpush3.bf16.msra.mxu0 %v1190_v55 }
  0x4e   : > { %1044 = vmatmul.mubr.msk.f32.gmra.mrb[14].mxu0 %vm324_vm0, %v304_v53  ;;  %v796_v53 = vld [vmem:[#allocation2 + $0x90] sm:$0xff] }
  0x4f   : > { %476 = vmatprep.mubr.f32.mxu0 %v1285_v0  ;;  %1159 = vmatpush1.bf16.msra.mxu1 %v1158_v5  ;;  %v1192_v56 = vpack.c.bf16 %v797_v54, %v796_v53  ;;  %v1200_v5 = vpack.c.bf16 %v801_v3, %v800_v2 }
  0x50   : > { %1161 = vmatprep.subr.bf16.mxu1 %v1160_v6  ;;  %v784_v6 = vld [vmem:[#allocation2 + $0x30] sm:$0xff] }
  0x51   : > { %1193 = vmatprep.subr.bf16.mxu0 %v1192_v56  ;;  %v1202_v10 = vpack.c.bf16 %v785_v7, %v784_v6 }
  0x52   : > { %1045 = vmatmul.mubr.msk.f32.gmra.mrb[16].mxu0 %vm324_vm0, %v305_v60  ;;  %v799_v60 = vld [vmem:[#allocation2 + $0xa8] sm:$0xff] }
  0x53   : > { %482 = vmatprep.mubr.f32.mxu0 %v1285_v0  ;;  %1163 = vmatpush1.bf16.msra.mxu1 %v1162_v12  ;;  %v1196_v62 = vpack.c.bf16 %v799_v60, %v798_v59  ;;  %v786_v12 = vld [vmem:[#allocation2 + $0x40] sm:$0xff] }
  0x54   : > { %1165 = vmatprep.subr.bf16.mxu1 %v1164_v13  ;;  %1195 = vmatpush3.bf16.msra.mxu0 %v1194_v61  ;;  %v787_v13 = vld [vmem:[#allocation2 + $0x48] sm:$0xff] }
  0x55   : > { %1197 = vmatprep.subr.bf16.mxu0 %v1196_v62  ;;  %v1206_v16 = vpack.c.bf16 %v787_v13, %v786_v12 }
  0x56   : > { %1046 = vmatmul.mubr.msk.f32.gmra.mrb[18].mxu0 %vm324_vm0, %v306_v4  ;;  %v1198_v4 = vpack.c.bf16 %v783_v1, %v782_v63 }
  0x57   : > { %488 = vmatprep.mubr.f32.mxu0 %v1285_v0  ;;  %1167 = vmatpush1.bf16.msra.mxu1 %v1166_v19  ;;  %v789_v19 = vld [vmem:[#allocation2 + $0x58] sm:$0xff] }
  0x58   : > { %1169 = vmatprep.subr.bf16.mxu1 %v1168_v20  ;;  %1199 = vmatpush3.bf16.msra.mxu0 %v1198_v4  ;;  %v806_v20 = vld [vmem:[#allocation2 + $0xe0] sm:$0xff] }
  0x59   : > { %1201 = vmatprep.subr.bf16.mxu0 %v1200_v5  ;;  %v1212_v23 = vpack.c.bf16 %v807_v21, %v806_v20 }
  0x5a   : > { %1047 = vmatmul.mubr.msk.f32.gmra.mrb[20].mxu0 %vm324_vm0, %v307_v11  ;;  %v1204_v11 = vpack.c.bf16 %v803_v9, %v802_v8 }
  0x5b   : > { %494 = vmatprep.mubr.f32.mxu0 %v1285_v0  ;;  %1171 = vmatpush1.bf16.msra.mxu1 %v1170_v26 }
  0x5c   : > { %1173 = vmatprep.subr.bf16.mxu1 %v1172_v27  ;;  %1203 = vmatpush3.bf16.msra.mxu0 %v1202_v10  ;;  %v314_v27 = vlaneseq }
  0x5d   : > { %1205 = vmatprep.subr.bf16.mxu0 %v1204_v11 }
  0x5e   : > { %1048 = vmatmul.mubr.msk.f32.gmra.mrb[22].mxu0 %vm324_vm0, %v308_v18  ;;  %v788_v18 = vld [vmem:[#allocation2 + $0x50] sm:$0xff]  ;;  %v1623_v28 = vshrl.u32 %v314_v27, 7 }
  0x5f   : > { %500 = vmatprep.mubr.f32.mxu0 %v1285_v0  ;;  %v588_v0 = vld [vmem:[%s1745_s3 + $0x1b8] sm:$0xff]  ;;  %1175 = vmatpush1.bf16.msra.mxu1 %v1174_v31  ;;  %v1210_v22 = vpack.c.bf16 %v789_v19, %v788_v18 }
  0x60   : > { %v1176_v32 = vpack.c.bf16 %v588_v0, %v586_v30  ;;  %1207 = vmatpush3.bf16.msra.mxu0 %v1206_v16  ;;  %v316_v29 = vsub.s32 0, %v1623_v28  ;;  %v312_v30 = vld [vmem:[%s1744_s2] sm:$0x3]  ;;  %v320_v0 = vsub.s32 1, %v1623_v28 }
  0x61   : > { %1209 = vmatprep.subr.bf16.mxu0 %v1208_v17 }
  0x62   : > { %1049 = vmatmul.mubr.msk.f32.gmra.mrb[24].mxu0 %vm324_vm0, %v309_v25  ;;  %1177 = vmatprep.subr.bf16.mxu1 %v1176_v32  ;;  %v791_v25 = vld [vmem:[#allocation2 + $0x68] sm:$0xff]  ;;  %v1632_v31 = vrot.slane %v312_v30, %v316_v29  ;;  %v1636_v32 = vrot.slane %v312_v30, %v320_v0 }
  0x63   : > { %1179 = vmatpush1.bf16.msra.mxu1 %v1178_v37  ;;  %v1214_v26 = vpack.c.bf16 %v791_v25, %v790_v24 }
  0x64   : > { %1181 = vmatprep.subr.bf16.mxu1 %v1180_v38  ;;  %1211 = vmatpush3.bf16.msra.mxu0 %v1210_v22 }
  0x65   : > { %1213 = vmatprep.subr.bf16.mxu0 %v1212_v23 }
  0x67   : > { %1183 = vmatpush1.bf16.msra.mxu1 %v1182_v41 }
  0x68   : > { %1185 = vmatprep.subr.bf16.mxu1 %v1184_v44  ;;  %1215 = vmatpush3.bf16.msra.mxu0 %v1214_v26 }
  0x6b   : > { %1187 = vmatpush1.bf16.msra.mxu1 %v1186_v47 }
 0x105   : > { %v430_v33 = vpop.f32.mrb[0].mxu0 }
 0x106   : > { %v431_v34 = vadd.f32 %v430_v33, %v1632_v31  ;;  %v432_v35 = vpop.f32.mrb[1].mxu0 }
 0x107   : > { %v433_v36 = vadd.f32 %v432_v35, %v1636_v32 }
 0x108   : > { %v507_v39 = vmax.f32 %v431_v34, 0.0 }
 0x109   : > { %v436_v37 = vpop.f32.mrb[2].mxu0  ;;  %v508_v38 = vmax.f32 %v433_v36, 0.0 }
 0x10a   : > { %v437_v40 = vadd.f32 %v436_v37, %v1632_v31  ;;  %v438_v41 = vpop.f32.mrb[3].mxu0 }
 0x10b   : > { %v439_v42 = vadd.f32 %v438_v41, %v1636_v32  ;;  %673 = vmatprep.mubr.f32.mxu1 %v508_v38 }
 0x10c   : > { %674 = vmatmul.mubr.f32.vlgmr.msra.gmra.mrb[0].mxu1 %v507_v39  ;;  %v509_v45 = vmax.f32 %v437_v40, 0.0 }
 0x10d   : > { %v510_v43 = vmax.f32 %v439_v42, 0.0  ;;  %v442_v44 = vpop.f32.mrb[4].mxu0 }
 0x10e   : > { %v443_v46 = vadd.f32 %v442_v44, %v1632_v31  ;;  %v444_v47 = vpop.f32.mrb[5].mxu0 }
 0x10f   : > { %v445_v48 = vadd.f32 %v444_v47, %v1636_v32  ;;  %679 = vmatprep.mubr.f32.mxu1 %v510_v43 }
 0x110   : > { %680 = vmatmul.mubr.f32.gmra.mrb[2].mxu1 %v509_v45  ;;  %v511_v51 = vmax.f32 %v443_v46, 0.0 }
 0x111   : > { %v512_v49 = vmax.f32 %v445_v48, 0.0  ;;  %v448_v50 = vpop.f32.mrb[6].mxu0 }
 0x112   : > { %v449_v52 = vadd.f32 %v448_v50, %v1632_v31  ;;  %v450_v53 = vpop.f32.mrb[7].mxu0 }
 0x113   : > { %v451_v54 = vadd.f32 %v450_v53, %v1636_v32  ;;  %685 = vmatprep.mubr.f32.mxu1 %v512_v49  ;;  %v809_v53 = vld [vmem:[#allocation2 + $0xf8] sm:$0xff] }
 0x114   : > { %686 = vmatmul.mubr.f32.gmra.mrb[4].mxu1 %v511_v51  ;;  %v513_v57 = vmax.f32 %v449_v52, 0.0  ;;  %v808_v52 = vld [vmem:[#allocation2 + $0xf0] sm:$0xff] }
 0x115   : > { %v514_v55 = vmax.f32 %v451_v54, 0.0  ;;  %v454_v56 = vpop.f32.mrb[8].mxu0  ;;  %v1216_v54 = vpack.c.bf16 %v809_v53, %v808_v52 }
 0x116   : > { %v455_v58 = vadd.f32 %v454_v56, %v1632_v31  ;;  %v456_v59 = vpop.f32.mrb[9].mxu0  ;;  %v793_v56 = vld [vmem:[#allocation2 + $0x78] sm:$0xff] }
 0x117   : > { %v457_v60 = vadd.f32 %v456_v59, %v1636_v32  ;;  %691 = vmatprep.mubr.f32.mxu1 %v514_v55  ;;  %v792_v55 = vld [vmem:[#allocation2 + $0x70] sm:$0xff]  ;;  %1217 = vmatprep.subr.bf16.mxu0 %v1216_v54 }
 0x118   : > { %692 = vmatmul.mubr.f32.gmra.mrb[6].mxu1 %v513_v57  ;;  %v515_v63 = vmax.f32 %v455_v58, 0.0  ;;  %v1218_v57 = vpack.c.bf16 %v793_v56, %v792_v55 }
 0x119   : > { %v516_v61 = vmax.f32 %v457_v60, 0.0  ;;  %v460_v62 = vpop.f32.mrb[10].mxu0 }
 0x11a   : > { %v461_v1 = vadd.f32 %v460_v62, %v1632_v31  ;;  %v462_v2 = vpop.f32.mrb[11].mxu0  ;;  %1219 = vmatpush3.bf16.msra.mxu0 %v1218_v57 }
 0x11b   : > { %v463_v3 = vadd.f32 %v462_v2, %v1636_v32  ;;  %697 = vmatprep.mubr.f32.mxu1 %v516_v61 }
 0x11c   : > { %698 = vmatmul.mubr.f32.gmra.mrb[8].mxu1 %v515_v63  ;;  %v517_v6 = vmax.f32 %v461_v1, 0.0 }
 0x11d   : > { %v518_v4 = vmax.f32 %v463_v3, 0.0  ;;  %v466_v5 = vpop.f32.mrb[12].mxu0 }
 0x11e   : > { %v467_v7 = vadd.f32 %v466_v5, %v1632_v31  ;;  %v468_v8 = vpop.f32.mrb[13].mxu0 }
 0x11f   : > { %v469_v9 = vadd.f32 %v468_v8, %v1636_v32  ;;  %703 = vmatprep.mubr.f32.mxu1 %v518_v4 }
 0x120   : > { %704 = vmatmul.mubr.f32.gmra.mrb[10].mxu1 %v517_v6  ;;  %v519_v12 = vmax.f32 %v467_v7, 0.0 }
 0x121   : > { %v520_v10 = vmax.f32 %v469_v9, 0.0  ;;  %v472_v11 = vpop.f32.mrb[14].mxu0 }
 0x122   : > { %v473_v13 = vadd.f32 %v472_v11, %v1632_v31  ;;  %v474_v14 = vpop.f32.mrb[15].mxu0 }
 0x123   : > { %v475_v15 = vadd.f32 %v474_v14, %v1636_v32  ;;  %709 = vmatprep.mubr.f32.mxu1 %v520_v10 }
 0x124   : > { %710 = vmatmul.mubr.f32.gmra.mrb[12].mxu1 %v519_v12  ;;  %v521_v18 = vmax.f32 %v473_v13, 0.0 }
 0x125   : > { %v522_v16 = vmax.f32 %v475_v15, 0.0  ;;  %v478_v17 = vpop.f32.mrb[16].mxu0 }
 0x126   : > { %v479_v19 = vadd.f32 %v478_v17, %v1632_v31  ;;  %v480_v20 = vpop.f32.mrb[17].mxu0 }
 0x127   : > { %v481_v21 = vadd.f32 %v480_v20, %v1636_v32  ;;  %715 = vmatprep.mubr.f32.mxu1 %v522_v16 }
 0x128   : > { %716 = vmatmul.mubr.f32.gmra.mrb[14].mxu1 %v521_v18  ;;  %v523_v24 = vmax.f32 %v479_v19, 0.0 }
 0x129   : > { %v524_v22 = vmax.f32 %v481_v21, 0.0  ;;  %v484_v23 = vpop.f32.mrb[18].mxu0 }
 0x12a   : > { %v485_v25 = vadd.f32 %v484_v23, %v1632_v31  ;;  %v486_v26 = vpop.f32.mrb[19].mxu0 }
 0x12b   : > { %v487_v27 = vadd.f32 %v486_v26, %v1636_v32  ;;  %721 = vmatprep.mubr.f32.mxu1 %v524_v22 }
 0x12c   : > { %722 = vmatmul.mubr.f32.gmra.mrb[16].mxu1 %v523_v24  ;;  %v525_v34 = vmax.f32 %v485_v25, 0.0 }
 0x12d   : > { %v526_v30 = vmax.f32 %v487_v27, 0.0  ;;  %v490_v33 = vpop.f32.mrb[20].mxu0 }
 0x12e   : > { %v491_v35 = vadd.f32 %v490_v33, %v1632_v31  ;;  %v492_v36 = vpop.f32.mrb[21].mxu0 }
 0x12f   : > { %v493_v37 = vadd.f32 %v492_v36, %v1636_v32  ;;  %727 = vmatprep.mubr.f32.mxu1 %v526_v30 }
 0x130   : > { %728 = vmatmul.mubr.f32.gmra.mrb[18].mxu1 %v525_v34  ;;  %v527_v40 = vmax.f32 %v491_v35, 0.0 }
 0x131   : > { %v528_v38 = vmax.f32 %v493_v37, 0.0  ;;  %v496_v39 = vpop.f32.mrb[22].mxu0 }
 0x132   : > { %v497_v41 = vadd.f32 %v496_v39, %v1632_v31  ;;  %v498_v42 = vpop.f32.mrb[23].mxu0 }
 0x133   : > { %v499_v43 = vadd.f32 %v498_v42, %v1636_v32  ;;  %733 = vmatprep.mubr.f32.mxu1 %v528_v38 }
 0x134   : > { %734 = vmatmul.mubr.f32.gmra.mrb[20].mxu1 %v527_v40  ;;  %v529_v46 = vmax.f32 %v497_v41, 0.0 }
 0x135   : > { %v530_v44 = vmax.f32 %v499_v43, 0.0  ;;  %v502_v45 = vpop.f32.mrb[24].mxu0 }
 0x136   : > { %v503_v47 = vadd.f32 %v502_v45, %v1632_v31  ;;  %v504_v48 = vpop.f32.mrb[25].mxu0  ;;  %v597_v31 = vld [vmem:[%s1746_s4] sm:$0x3] }
 0x137   : > { %v505_v49 = vadd.f32 %v504_v48, %v1636_v32  ;;  %739 = vmatprep.mubr.f32.mxu1 %v530_v44  ;;  %v1669_v32 = vrot.slane %v597_v31, %v316_v29  ;;  %v1673_v58 = vrot.slane %v597_v31, %v320_v0 }
 0x138   : > { %740 = vmatmul.mubr.f32.gmra.mrb[22].mxu1 %v529_v46  ;;  %v531_v51 = vmax.f32 %v503_v47, 0.0 }
 0x139   : > { %v532_v50 = vmax.f32 %v505_v49, 0.0 }
 0x13b   : > { %745 = vmatprep.mubr.f32.mxu1 %v532_v50 }
 0x13c   : > { %746 = vmatmul.mubr.f32.gmra.mrb[24].mxu1 %v531_v51 }
 0x1df   : > { %v675_v59 = vpop.f32.mrb[0].mxu1 }
 0x1e0   : > { %v676_v60 = vadd.f32 %v675_v59, %v1669_v32  ;;  %v677_v61 = vpop.f32.mrb[1].mxu1 }
 0x1e1   : > { %v678_v62 = vadd.f32 %v677_v61, %v1673_v58 }
 0x1e2   : > { %v752_v2 = vmax.f32 %v676_v60, 0.0 }
 0x1e3   : > { %v753_v63 = vmax.f32 %v678_v62, 0.0  ;;  %v681_v1 = vpop.f32.mrb[2].mxu1 }
 0x1e4   : > { %v682_v3 = vadd.f32 %v681_v1, %v1669_v32  ;;  %v683_v4 = vpop.f32.mrb[3].mxu1 }
 0x1e5   : > { %v684_v5 = vadd.f32 %v683_v4, %v1673_v58  ;;  %881 = vmatprep.mubr.f32.mxu0 %v753_v63 }
 0x1e6   : > { %882 = vmatmul.mubr.f32.vlgmr.msra.gmra.mrb[26].mxu0 %v752_v2  ;;  %v754_v0 = vmax.f32 %v682_v3, 0.0 }
 0x1e7   : > { %v755_v29 = vmax.f32 %v684_v5, 0.0  ;;  %v687_v28 = vpop.f32.mrb[4].mxu1 }
 0x1e8   : > { %v688_v6 = vadd.f32 %v687_v28, %v1669_v32  ;;  %v689_v7 = vpop.f32.mrb[5].mxu1 }
 0x1e9   : > { %v690_v8 = vadd.f32 %v689_v7, %v1673_v58  ;;  %886 = vmatprep.mubr.f32.mxu0 %v755_v29 }
 0x1ea   : > { %887 = vmatmul.mubr.f32.gmra.mrb[28].mxu0 %v754_v0  ;;  %v756_v11 = vmax.f32 %v688_v6, 0.0 }
 0x1eb   : > { %v757_v9 = vmax.f32 %v690_v8, 0.0  ;;  %v693_v10 = vpop.f32.mrb[6].mxu1 }
 0x1ec   : > { %v694_v12 = vadd.f32 %v693_v10, %v1669_v32  ;;  %v695_v13 = vpop.f32.mrb[7].mxu1  ;;  %v1704_v10 = vld [vmem:[%s1748_s6] ss:$0 sm:$0xff] }
 0x1ed   : > { %v696_v14 = vadd.f32 %v695_v13, %v1673_v58  ;;  %891 = vmatprep.mubr.f32.mxu0 %v757_v9 }
 0x1ee   : > { %892 = vmatmul.mubr.f32.gmra.mrb[30].mxu0 %v756_v11  ;;  %v758_v17 = vmax.f32 %v694_v12, 0.0 }
 0x1ef   : > { %v759_v15 = vmax.f32 %v696_v14, 0.0  ;;  %v699_v16 = vpop.f32.mrb[8].mxu1 }
 0x1f0   : > { %v700_v18 = vadd.f32 %v699_v16, %v1669_v32  ;;  %v701_v19 = vpop.f32.mrb[9].mxu1 }
 0x1f1   : > { %v702_v20 = vadd.f32 %v701_v19, %v1673_v58  ;;  %896 = vmatprep.mubr.f32.mxu0 %v759_v15 }
 0x1f2   : > { %897 = vmatmul.mubr.f32.gmra.mrb[32].mxu0 %v758_v17  ;;  %v760_v23 = vmax.f32 %v700_v18, 0.0 }
 0x1f3   : > { %v761_v21 = vmax.f32 %v702_v20, 0.0  ;;  %v705_v22 = vpop.f32.mrb[10].mxu1 }
 0x1f4   : > { %v706_v24 = vadd.f32 %v705_v22, %v1669_v32  ;;  %v707_v25 = vpop.f32.mrb[11].mxu1 }
 0x1f5   : > { %v708_v26 = vadd.f32 %v707_v25, %v1673_v58  ;;  %901 = vmatprep.mubr.f32.mxu0 %v761_v21 }
 0x1f6   : > { %902 = vmatmul.mubr.f32.gmra.mrb[34].mxu0 %v760_v23  ;;  %v762_v33 = vmax.f32 %v706_v24, 0.0 }
 0x1f7   : > { %v763_v27 = vmax.f32 %v708_v26, 0.0  ;;  %v711_v30 = vpop.f32.mrb[12].mxu1 }
 0x1f8   : > { %v712_v34 = vadd.f32 %v711_v30, %v1669_v32  ;;  %v713_v35 = vpop.f32.mrb[13].mxu1 }
 0x1f9   : > { %v714_v36 = vadd.f32 %v713_v35, %v1673_v58  ;;  %906 = vmatprep.mubr.f32.mxu0 %v763_v27 }
 0x1fa   : > { %907 = vmatmul.mubr.f32.gmra.mrb[36].mxu0 %v762_v33  ;;  %v764_v39 = vmax.f32 %v712_v34, 0.0 }
 0x1fb   : > { %v765_v37 = vmax.f32 %v714_v36, 0.0  ;;  %v717_v38 = vpop.f32.mrb[14].mxu1 }
 0x1fc   : > { %v718_v40 = vadd.f32 %v717_v38, %v1669_v32  ;;  %v719_v41 = vpop.f32.mrb[15].mxu1 }
 0x1fd   : > { %v720_v42 = vadd.f32 %v719_v41, %v1673_v58  ;;  %911 = vmatprep.mubr.f32.mxu0 %v765_v37 }
 0x1fe   : > { %912 = vmatmul.mubr.f32.gmra.mrb[38].mxu0 %v764_v39  ;;  %v766_v45 = vmax.f32 %v718_v40, 0.0 }
 0x1ff   : > { %v767_v43 = vmax.f32 %v720_v42, 0.0  ;;  %v723_v44 = vpop.f32.mrb[16].mxu1 }
 0x200   : > { %v724_v46 = vadd.f32 %v723_v44, %v1669_v32  ;;  %v725_v47 = vpop.f32.mrb[17].mxu1 }
 0x201   : > { %v726_v48 = vadd.f32 %v725_v47, %v1673_v58  ;;  %916 = vmatprep.mubr.f32.mxu0 %v767_v43 }
 0x202   : > { %917 = vmatmul.mubr.f32.gmra.mrb[40].mxu0 %v766_v45  ;;  %v768_v51 = vmax.f32 %v724_v46, 0.0 }
 0x203   : > { %v769_v49 = vmax.f32 %v726_v48, 0.0  ;;  %v729_v50 = vpop.f32.mrb[18].mxu1 }
 0x204   : > { %v730_v52 = vadd.f32 %v729_v50, %v1669_v32  ;;  %v731_v53 = vpop.f32.mrb[19].mxu1 }
 0x205   : > { %v732_v54 = vadd.f32 %v731_v53, %v1673_v58  ;;  %921 = vmatprep.mubr.f32.mxu0 %v769_v49 }
 0x206   : > { %922 = vmatmul.mubr.f32.gmra.mrb[42].mxu0 %v768_v51  ;;  %v770_v57 = vmax.f32 %v730_v52, 0.0 }
 0x207   : > { %v771_v55 = vmax.f32 %v732_v54, 0.0  ;;  %v735_v56 = vpop.f32.mrb[20].mxu1 }
 0x208   : > { %v736_v31 = vadd.f32 %v735_v56, %v1669_v32  ;;  %v737_v59 = vpop.f32.mrb[21].mxu1 }
 0x209   : > { %v738_v60 = vadd.f32 %v737_v59, %v1673_v58  ;;  %926 = vmatprep.mubr.f32.mxu0 %v771_v55 }
 0x20a   : > { %927 = vmatmul.mubr.f32.gmra.mrb[44].mxu0 %v770_v57  ;;  %v772_v63 = vmax.f32 %v736_v31, 0.0 }
 0x20b   : > { %v773_v61 = vmax.f32 %v738_v60, 0.0  ;;  %v741_v62 = vpop.f32.mrb[22].mxu1 }
 0x20c   : > { %v742_v1 = vadd.f32 %v741_v62, %v1669_v32  ;;  %v743_v2 = vpop.f32.mrb[23].mxu1 }
 0x20d   : > { %v744_v3 = vadd.f32 %v743_v2, %v1673_v58  ;;  %931 = vmatprep.mubr.f32.mxu0 %v773_v61 }
 0x20e   : > { %932 = vmatmul.mubr.f32.gmra.mrb[46].mxu0 %v772_v63  ;;  %v774_v29 = vmax.f32 %v742_v1, 0.0 }
 0x20f   : > { %v775_v4 = vmax.f32 %v744_v3, 0.0  ;;  %v747_v5 = vpop.f32.mrb[24].mxu1 }
 0x210   : > { %v748_v28 = vadd.f32 %v747_v5, %v1669_v32  ;;  %v749_v0 = vpop.f32.mrb[25].mxu1 }
 0x211   : > { %v750_v6 = vadd.f32 %v749_v0, %v1673_v58  ;;  %936 = vmatprep.mubr.f32.mxu0 %v775_v4 }
 0x212   : > { %937 = vmatmul.mubr.f32.gmra.mrb[48].mxu0 %v774_v29  ;;  %v776_v8 = vmax.f32 %v748_v28, 0.0 }
 0x213   : > { %v777_v7 = vmax.f32 %v750_v6, 0.0 }
 0x215   : > { %941 = vmatprep.mubr.f32.mxu0 %v777_v7 }
 0x216   : > { %942 = vmatmul.mubr.f32.gmra.mrb[50].mxu0 %v776_v8 }
 0x2b9   : > { %v1085_v9 = vpop.f32.mrb[26].mxu0 }
 0x2ba   : > { %v1086_v11 = vpop.f32.mrb[27].mxu0 }
 0x2bb   : > { %v1087_v12 = vadd.f32 %v1086_v11, %v1085_v9 }
 0x2bd   : > { %v884_v32 = vadd.f32 %v1087_v12, %v1704_v10  ;;  %v1088_v58 = vpop.f32.mrb[28].mxu0 }
 0x2be   : > { %v1089_v13 = vpop.f32.mrb[29].mxu0 }
 0x2bf   : > { %947 = vst [vmem:[%s1711_s8] sm:$0xff] %v884_v32  ;;  %v1090_v14 = vadd.f32 %v1089_v13, %v1088_v58 }
 0x2c1   : > { %v889_v15 = vadd.f32 %v1090_v14, %v1704_v10  ;;  %v1091_v16 = vpop.f32.mrb[30].mxu0 }
 0x2c2   : > { %v1092_v17 = vpop.f32.mrb[31].mxu0 }
 0x2c3   : > { %948 = vst [vmem:[%s1711_s8 + $0x8] sm:$0xff] %v889_v15  ;;  %v1093_v18 = vadd.f32 %v1092_v17, %v1091_v16 }
 0x2c5   : > { %v894_v19 = vadd.f32 %v1093_v18, %v1704_v10  ;;  %v1094_v20 = vpop.f32.mrb[32].mxu0 }
 0x2c6   : > { %v1095_v21 = vpop.f32.mrb[33].mxu0 }
 0x2c7   : > { %949 = vst [vmem:[%s1711_s8 + $0x10] sm:$0xff] %v894_v19  ;;  %v1096_v22 = vadd.f32 %v1095_v21, %v1094_v20 }
 0x2c9   : > { %v899_v23 = vadd.f32 %v1096_v22, %v1704_v10  ;;  %v1097_v24 = vpop.f32.mrb[34].mxu0 }
 0x2ca   : > { %v1098_v25 = vpop.f32.mrb[35].mxu0 }
 0x2cb   : > { %950 = vst [vmem:[%s1711_s8 + $0x18] sm:$0xff] %v899_v23  ;;  %v1099_v26 = vadd.f32 %v1098_v25, %v1097_v24 }
 0x2cd   : > { %v904_v27 = vadd.f32 %v1099_v26, %v1704_v10  ;;  %v1100_v30 = vpop.f32.mrb[36].mxu0 }
 0x2ce   : > { %v1101_v33 = vpop.f32.mrb[37].mxu0 }
 0x2cf   : > { %951 = vst [vmem:[%s1711_s8 + $0x20] sm:$0xff] %v904_v27  ;;  %v1102_v34 = vadd.f32 %v1101_v33, %v1100_v30 }
 0x2d1   : > { %v909_v35 = vadd.f32 %v1102_v34, %v1704_v10  ;;  %v1103_v36 = vpop.f32.mrb[38].mxu0 }
 0x2d2   : > { %v1104_v37 = vpop.f32.mrb[39].mxu0 }
 0x2d3   : > { %952 = vst [vmem:[%s1711_s8 + $0x28] sm:$0xff] %v909_v35  ;;  %v1105_v38 = vadd.f32 %v1104_v37, %v1103_v36 }
 0x2d5   : > { %v914_v39 = vadd.f32 %v1105_v38, %v1704_v10  ;;  %v1106_v40 = vpop.f32.mrb[40].mxu0 }
 0x2d6   : > { %v1107_v41 = vpop.f32.mrb[41].mxu0 }
 0x2d7   : > { %953 = vst [vmem:[%s1711_s8 + $0x30] sm:$0xff] %v914_v39  ;;  %v1108_v42 = vadd.f32 %v1107_v41, %v1106_v40 }
 0x2d9   : > { %v919_v43 = vadd.f32 %v1108_v42, %v1704_v10  ;;  %v1109_v44 = vpop.f32.mrb[42].mxu0 }
 0x2da   : > { %v1110_v45 = vpop.f32.mrb[43].mxu0 }
 0x2db   : > { %954 = vst [vmem:[%s1711_s8 + $0x38] sm:$0xff] %v919_v43  ;;  %v1111_v46 = vadd.f32 %v1110_v45, %v1109_v44 }
 0x2dd   : > { %v924_v47 = vadd.f32 %v1111_v46, %v1704_v10  ;;  %v1112_v48 = vpop.f32.mrb[44].mxu0 }
 0x2de   : > { %v1113_v49 = vpop.f32.mrb[45].mxu0 }
 0x2df   : > { %955 = vst [vmem:[%s1711_s8 + $0x40] sm:$0xff] %v924_v47  ;;  %v1114_v50 = vadd.f32 %v1113_v49, %v1112_v48 }
 0x2e1   : > { %v929_v51 = vadd.f32 %v1114_v50, %v1704_v10  ;;  %v1115_v52 = vpop.f32.mrb[46].mxu0 }
 0x2e2   : > { %v1116_v53 = vpop.f32.mrb[47].mxu0 }
 0x2e3   : > { %956 = vst [vmem:[%s1711_s8 + $0x48] sm:$0xff] %v929_v51  ;;  %v1117_v54 = vadd.f32 %v1116_v53, %v1115_v52 }
 0x2e5   : > { %v934_v55 = vadd.f32 %v1117_v54, %v1704_v10  ;;  %v1118_v56 = vpop.f32.mrb[48].mxu0 }
 0x2e6   : > { %v1119_v57 = vpop.f32.mrb[49].mxu0 }
 0x2e7   : > { %957 = vst [vmem:[%s1711_s8 + $0x50] sm:$0xff] %v934_v55  ;;  %v1120_v31 = vadd.f32 %v1119_v57, %v1118_v56 }
 0x2e9   : > { %v939_v59 = vadd.f32 %v1120_v31, %v1704_v10  ;;  %v1121_v60 = vpop.f32.mrb[50].mxu0 }
 0x2ea   : > { %v1122_v61 = vpop.f32.mrb[51].mxu0 }
 0x2eb   : > { %958 = vst [vmem:[%s1711_s8 + $0x58] sm:$0xff] %v939_v59  ;;  %v1123_v62 = vadd.f32 %v1122_v61, %v1121_v60 }
 0x2ed   : > { %v944_v63 = vadd.f32 %v1123_v62, %v1704_v10 }
 0x2ef   : > { %959 = vst [vmem:[%s1711_s8 + $0x60] sm:$0xff] %v944_v63 }
 0x2f0 PF: > { %s18_s24 = sadd.s32 1, %s1280_s24  }
 0x2f1   : > { %p15_p3 = scmp.ge.s32.totalorder %s18_s24, 4  }
 0x2f3   :  { %17 = sbr.rel (!%p15_p3) target bundleno = 1 (0x1), region = 83 }
 0x2fa   :  { %982 = vsyncpa [#allocation3], 1 }
 0x2fb   :  { %984 = vsyncpa [#allocation3 + $0x1], 1 }

</bundles_post_ra>
